<compile_context>
chip_gen: v6e
topology: v6e:2x2x1
jax: 0.10.0
libtpu: 0.0.40
codegen_flags: <defaults>
</compile_context>

<pallas_src>
import jax
import jax.numpy as jnp
from jax.experimental import pallas as pl
from jax.experimental.pallas import tpu as pltpu


# -----------------------------------------------------------------------------
# Fully fused kernel: recurrence + means + fc1/fc2 + softmax + blend
# -----------------------------------------------------------------------------
def _fused_rnn_kernel(xp_ref, whh_ref, h0_ref, fc1wT_ref, fc1b_ref,
                      fc2w_ref, fc2b_ref, y_ref, hN_ref, yacc_ref):
    L, N, H2 = yacc_ref.shape
    H = H2 // 2

    whh_b = whh_ref[...]                            # (2H, 2H) bf16, loop-resident

    def step(t, h_prev):
        # pre-projected input for step t + recurrent matmul (single MXU dot)
        pre = xp_ref[t] + jnp.dot(h_prev.astype(jnp.bfloat16), whh_b,
                                  preferred_element_type=jnp.float32)
        h_new = jnp.tanh(pre)                       # elementwise kept in f32
        yacc_ref[t] = h_new                         # stays in VMEM only
        return h_new

    h_fin = jax.lax.fori_loop(0, L, step, h0_ref[...], unroll=True)
    hN_ref[...] = h_fin                             # final hidden [h1 | h2]

    y_all = yacc_ref[...]                           # (L, N, 2H) f32
    y1 = y_all[:, :, :H]
    y2 = y_all[:, :, H:]

    # single end-of-sequence reduction (no per-step scalar sums / stores)
    inv = jnp.float32(1.0 / (L * N * H))
    m1 = jnp.sum(y1) * inv
    m2 = jnp.sum(y2) * inv

    # fc1 ([m1, m2] -> H) as elementwise ops, fc2 (H -> 2) as a lane reduce.
    v = fc1wT_ref[0:1, :] * m1 + fc1wT_ref[1:2, :] * m2 + fc1b_ref[...]      # (1, H)
    logits = jnp.sum(fc2w_ref[...] * v, axis=1, keepdims=True) + fc2b_ref[...]  # (2, 1)

    # softmax over the 2 logits
    e = jnp.exp(logits - jnp.max(logits))
    denom = jnp.sum(e)
    w0 = jnp.sum(e[0:1, :]) / denom
    w1 = jnp.sum(e[1:2, :]) / denom

    # blended output (only this + hN are written to HBM)
    y_ref[...] = y1 * w0 + y2 * w1


def _fused_forward(xp, whh_bd_T, h0_cat, fc1_wT, fc1_b, fc2_w, fc2_b):
    L, N, H2 = xp.shape
    H = H2 // 2
    vmem = lambda: pl.BlockSpec(memory_space=pltpu.MemorySpace.VMEM)
    return pl.pallas_call(
        _fused_rnn_kernel,
        out_shape=(
            jax.ShapeDtypeStruct((L, N, H), jnp.float32),   # blended y
            jax.ShapeDtypeStruct((N, H2), jnp.float32),     # final [h1 | h2]
        ),
        in_specs=[vmem() for _ in range(7)],
        out_specs=(vmem(), vmem()),
        scratch_shapes=[pltpu.VMEM((L, N, H2), jnp.float32)],  # y1|y2 slab
    )(xp, whh_bd_T, h0_cat, fc1_wT, fc1_b, fc2_w, fc2_b)


# -----------------------------------------------------------------------------
# Parameters (kernel-ready layouts prepared once at init)
# -----------------------------------------------------------------------------
def init_params(key, input_size, hidden_size):
    ks = jax.random.split(key, 8)
    H, I = hidden_size, input_size
    rb = 1.0 / jnp.sqrt(jnp.float32(H))
    fc1b = 1.0 / jnp.sqrt(jnp.float32(2))
    fc2b = 1.0 / jnp.sqrt(jnp.float32(H))
    u = lambda k, shape, b: jax.random.uniform(k, shape, jnp.float32, -b, b)
    p = {
        "rnn1_wih": u(ks[0], (H, I), rb), "rnn1_whh": u(ks[1], (H, H), rb),
        "rnn2_wih": u(ks[2], (H, I), rb), "rnn2_whh": u(ks[3], (H, H), rb),
        "fc1_w": u(ks[4], (H, 2), fc1b), "fc1_b": u(ks[5], (H,), fc1b),
        "fc2_w": u(ks[6], (2, H), fc2b), "fc2_b": u(ks[7], (2,), fc2b),
    }
    # Pre-fused / pre-transposed / pre-cast (bf16 for the MXU) — done ONCE here.
    wih_cat_T = jnp.concatenate([p["rnn1_wih"].T, p["rnn2_wih"].T], axis=1)   # (I, 2H)
    whh_bd_T = jnp.zeros((2 * H, 2 * H), jnp.float32)
    whh_bd_T = whh_bd_T.at[:H, :H].set(p["rnn1_whh"].T)
    whh_bd_T = whh_bd_T.at[H:, H:].set(p["rnn2_whh"].T)                       # (2H, 2H)
    p["wih_cat_T"] = wih_cat_T.astype(jnp.bfloat16)
    p["whh_bd_T"] = whh_bd_T.astype(jnp.bfloat16)
    p["fc1_wT"] = p["fc1_w"].T                      # (2, H)
    p["fc1_b_row"] = p["fc1_b"].reshape(1, H)       # (1, H)
    p["fc2_b_col"] = p["fc2_b"].reshape(2, 1)       # (2, 1)
    return p


# -----------------------------------------------------------------------------
# Module forward (glue in XLA, hot path in the fused Pallas kernel)
# -----------------------------------------------------------------------------
@jax.jit
def rnn_module_forward(params, x, h=None):
    L, N, I = x.shape
    H = params["fc1_wT"].shape[1]
    if h is None:
        h_cat = jnp.zeros((N, 2 * H), jnp.float32)
    else:
        h_cat = jnp.concatenate([h[0], h[1]], axis=1)

    # Hoisted input projection: one batched MXU matmul for all steps & branches.
    xp = jnp.dot(x.reshape(L * N, I).astype(jnp.bfloat16), params["wih_cat_T"],
                 preferred_element_type=jnp.float32).reshape(L, N, 2 * H)

    y, h_fin = _fused_forward(xp, params["whh_bd_T"], h_cat,
                              params["fc1_wT"], params["fc1_b_row"],
                              params["fc2_w"], params["fc2_b_col"])
    h_out = jnp.stack([h_fin[:, :H], h_fin[:, H:]], axis=0)   # (2, N, H)
    return y, h_out


# -----------------------------------------------------------------------------
# Pure-JAX reference (same bf16-operand / f32-accumulate matmul convention)
# -----------------------------------------------------------------------------
def reference_forward(params, x, h=None):
    L, N, I = x.shape
    H = params["rnn1_whh"].shape[0]
    if h is None:
        h = jnp.zeros((2, N, H), jnp.float32)

    def run_rnn(h0, wih, whh):
        wih_b = wih.astype(jnp.bfloat16)
        whh_b = whh.astype(jnp.bfloat16)
        def step(hc, xt):
            pre = (jnp.dot(xt.astype(jnp.bfloat16), wih_b.T,
                           preferred_element_type=jnp.float32)
                   + jnp.dot(hc.astype(jnp.bfloat16), whh_b.T,
                             preferred_element_type=jnp.float32))
            hn = jnp.tanh(pre)
            return hn, hn
        hN, ys = jax.lax.scan(step, h0, x)
        return ys, hN

    y1, h1 = run_rnn(h[0], params["rnn1_wih"], params["rnn1_whh"])
    y2, h2 = run_rnn(h[1], params["rnn2_wih"], params["rnn2_whh"])
    h_out = jnp.stack([h1, h2], axis=0)

    m1, m2 = jnp.mean(y1), jnp.mean(y2)
    v = params["fc1_w"][:, 0] * m1 + params["fc1_w"][:, 1] * m2 + params["fc1_b"]
    logits = jnp.sum(params["fc2_w"] * v[None, :], axis=1) + params["fc2_b"]
    w = jax.nn.softmax(logits, axis=0)
    y = y1 * w[0] + y2 * w[1]
    return y, h_out


if __name__ == "__main__":
    L, N, input_size, hidden_size = 8, 2, 16, 32

    key = jax.random.PRNGKey(0)
    k_param, k_x = jax.random.split(key)
    params = init_params(k_param, input_size, hidden_size)
    x = jax.random.normal(k_x, (L, N, input_size), jnp.float32)

    y, h = rnn_module_forward(params, x)
    y = jax.block_until_ready(y)
    h = jax.block_until_ready(h)

    y_ref, h_ref = reference_forward(params, x)
    assert y.shape == (L, N, hidden_size) and h.shape == (2, N, hidden_size)
    # bf16 MXU operands with f32 accumulation in both kernel and reference;
    # 5e-3 tolerance covers rare bf16 requantization differences of the carried
    # hidden state (accuracy/perf trade-off flagged in the review).
    assert jnp.allclose(y, y_ref, atol=5e-3, rtol=5e-3), float(jnp.max(jnp.abs(y - y_ref)))
    assert jnp.allclose(h, h_ref, atol=5e-3, rtol=5e-3), float(jnp.max(jnp.abs(h - h_ref)))

    print("KERNEL_OK")
</pallas_src>

<mosaic_0001>
module attributes {stable_mosaic.version = 11 : i64} {
  func.func @_fused_rnn_kernel(%arg0: memref<8x2x64xf32, #tpu.memory_space<vmem>>, %arg1: memref<64x64xbf16, #tpu.memory_space<vmem>>, %arg2: memref<2x64xf32, #tpu.memory_space<vmem>>, %arg3: memref<2x32xf32, #tpu.memory_space<vmem>>, %arg4: memref<1x32xf32, #tpu.memory_space<vmem>>, %arg5: memref<2x32xf32, #tpu.memory_space<vmem>>, %arg6: memref<2x1xf32, #tpu.memory_space<vmem>>, %arg7: memref<8x2x32xf32, #tpu.memory_space<vmem>>, %arg8: memref<2x64xf32, #tpu.memory_space<vmem>>, %arg9: memref<8x2x64xf32, #tpu.memory_space<vmem>>) attributes {dimension_semantics = [], scalar_prefetch = 0 : i64, scratch_operands = 1 : i64, tpu.core_type = #tpu.core_type<tc>} {
    %c0 = arith.constant 0 : index
    %c0_0 = arith.constant 0 : index
    %0 = vector.load %arg1[%c0, %c0_0] : memref<64x64xbf16, #tpu.memory_space<vmem>>, vector<64x64xbf16>
    %c0_1 = arith.constant 0 : index
    %c0_2 = arith.constant 0 : index
    %1 = vector.load %arg2[%c0_1, %c0_2] : memref<2x64xf32, #tpu.memory_space<vmem>>, vector<2x64xf32>
    %c0_i32 = arith.constant 0 : i32
    %2 = arith.index_cast %c0_i32 : i32 to index
    %c0_3 = arith.constant 0 : index
    %c0_4 = arith.constant 0 : index
    %3 = vector.load %arg0[%2, %c0_3, %c0_4] : memref<8x2x64xf32, #tpu.memory_space<vmem>>, vector<1x2x64xf32>
    %4 = vector.shape_cast %3 : vector<1x2x64xf32> to vector<2x64xf32>
    %5 = arith.truncf %1 : vector<2x64xf32> to vector<2x64xbf16>
    %cst = arith.constant dense<0.000000e+00> : vector<2x64xf32>
    %6 = tpu.matmul %5, %0, %cst {dimension_numbers = #tpu.dot_dimension_numbers<[1], [0], [0], [1], [0, 0, 1, 1], [], []>} : vector<2x64xbf16>, vector<64x64xbf16>, vector<2x64xf32> -> vector<2x64xf32>
    %7 = arith.addf %4, %6 : vector<2x64xf32>
    %8 = math.tanh %7 : vector<2x64xf32>
    %9 = arith.index_cast %c0_i32 : i32 to index
    %c0_5 = arith.constant 0 : index
    %c0_6 = arith.constant 0 : index
    %10 = vector.load %arg9[%9, %c0_5, %c0_6] : memref<8x2x64xf32, #tpu.memory_space<vmem>>, vector<1x2x64xf32>
    %11 = vector.shape_cast %10 : vector<1x2x64xf32> to vector<2x64xf32>
    %12 = vector.shape_cast %8 : vector<2x64xf32> to vector<1x2x64xf32>
    tpu.vector_store %arg9[%9, %c0_5, %c0_6], %12 {strides = array<i32>} : memref<8x2x64xf32, #tpu.memory_space<vmem>>, vector<1x2x64xf32>,
    %c1_i32 = arith.constant 1 : i32
    %13 = arith.index_cast %c1_i32 : i32 to index
    %c0_7 = arith.constant 0 : index
    %c0_8 = arith.constant 0 : index
    %14 = vector.load %arg0[%13, %c0_7, %c0_8] : memref<8x2x64xf32, #tpu.memory_space<vmem>>, vector<1x2x64xf32>
    %15 = vector.shape_cast %14 : vector<1x2x64xf32> to vector<2x64xf32>
    %16 = arith.truncf %8 : vector<2x64xf32> to vector<2x64xbf16>
    %cst_9 = arith.constant dense<0.000000e+00> : vector<2x64xf32>
    %17 = tpu.matmul %16, %0, %cst_9 {dimension_numbers = #tpu.dot_dimension_numbers<[1], [0], [0], [1], [0, 0, 1, 1], [], []>} : vector<2x64xbf16>, vector<64x64xbf16>, vector<2x64xf32> -> vector<2x64xf32>
    %18 = arith.addf %15, %17 : vector<2x64xf32>
    %19 = math.tanh %18 : vector<2x64xf32>
    %20 = arith.index_cast %c1_i32 : i32 to index
    %c0_10 = arith.constant 0 : index
    %c0_11 = arith.constant 0 : index
    %21 = vector.load %arg9[%20, %c0_10, %c0_11] : memref<8x2x64xf32, #tpu.memory_space<vmem>>, vector<1x2x64xf32>
    %22 = vector.shape_cast %21 : vector<1x2x64xf32> to vector<2x64xf32>
    %23 = vector.shape_cast %19 : vector<2x64xf32> to vector<1x2x64xf32>
    tpu.vector_store %arg9[%20, %c0_10, %c0_11], %23 {strides = array<i32>} : memref<8x2x64xf32, #tpu.memory_space<vmem>>, vector<1x2x64xf32>,
    %c2_i32 = arith.constant 2 : i32
    %24 = arith.index_cast %c2_i32 : i32 to index
    %c0_12 = arith.constant 0 : index
    %c0_13 = arith.constant 0 : index
    %25 = vector.load %arg0[%24, %c0_12, %c0_13] : memref<8x2x64xf32, #tpu.memory_space<vmem>>, vector<1x2x64xf32>
    %26 = vector.shape_cast %25 : vector<1x2x64xf32> to vector<2x64xf32>
    %27 = arith.truncf %19 : vector<2x64xf32> to vector<2x64xbf16>
    %cst_14 = arith.constant dense<0.000000e+00> : vector<2x64xf32>
    %28 = tpu.matmul %27, %0, %cst_14 {dimension_numbers = #tpu.dot_dimension_numbers<[1], [0], [0], [1], [0, 0, 1, 1], [], []>} : vector<2x64xbf16>, vector<64x64xbf16>, vector<2x64xf32> -> vector<2x64xf32>
    %29 = arith.addf %26, %28 : vector<2x64xf32>
    %30 = math.tanh %29 : vector<2x64xf32>
    %31 = arith.index_cast %c2_i32 : i32 to index
    %c0_15 = arith.constant 0 : index
    %c0_16 = arith.constant 0 : index
    %32 = vector.load %arg9[%31, %c0_15, %c0_16] : memref<8x2x64xf32, #tpu.memory_space<vmem>>, vector<1x2x64xf32>
    %33 = vector.shape_cast %32 : vector<1x2x64xf32> to vector<2x64xf32>
    %34 = vector.shape_cast %30 : vector<2x64xf32> to vector<1x2x64xf32>
    tpu.vector_store %arg9[%31, %c0_15, %c0_16], %34 {strides = array<i32>} : memref<8x2x64xf32, #tpu.memory_space<vmem>>, vector<1x2x64xf32>,
    %c3_i32 = arith.constant 3 : i32
    %35 = arith.index_cast %c3_i32 : i32 to index
    %c0_17 = arith.constant 0 : index
    %c0_18 = arith.constant 0 : index
    %36 = vector.load %arg0[%35, %c0_17, %c0_18] : memref<8x2x64xf32, #tpu.memory_space<vmem>>, vector<1x2x64xf32>
    %37 = vector.shape_cast %36 : vector<1x2x64xf32> to vector<2x64xf32>
    %38 = arith.truncf %30 : vector<2x64xf32> to vector<2x64xbf16>
    %cst_19 = arith.constant dense<0.000000e+00> : vector<2x64xf32>
    %39 = tpu.matmul %38, %0, %cst_19 {dimension_numbers = #tpu.dot_dimension_numbers<[1], [0], [0], [1], [0, 0, 1, 1], [], []>} : vector<2x64xbf16>, vector<64x64xbf16>, vector<2x64xf32> -> vector<2x64xf32>
    %40 = arith.addf %37, %39 : vector<2x64xf32>
    %41 = math.tanh %40 : vector<2x64xf32>
    %42 = arith.index_cast %c3_i32 : i32 to index
    %c0_20 = arith.constant 0 : index
    %c0_21 = arith.constant 0 : index
    %43 = vector.load %arg9[%42, %c0_20, %c0_21] : memref<8x2x64xf32, #tpu.memory_space<vmem>>, vector<1x2x64xf32>
    %44 = vector.shape_cast %43 : vector<1x2x64xf32> to vector<2x64xf32>
    %45 = vector.shape_cast %41 : vector<2x64xf32> to vector<1x2x64xf32>
    tpu.vector_store %arg9[%42, %c0_20, %c0_21], %45 {strides = array<i32>} : memref<8x2x64xf32, #tpu.memory_space<vmem>>, vector<1x2x64xf32>,
    %c4_i32 = arith.constant 4 : i32
    %46 = arith.index_cast %c4_i32 : i32 to index
    %c0_22 = arith.constant 0 : index
    %c0_23 = arith.constant 0 : index
    %47 = vector.load %arg0[%46, %c0_22, %c0_23] : memref<8x2x64xf32, #tpu.memory_space<vmem>>, vector<1x2x64xf32>
    %48 = vector.shape_cast %47 : vector<1x2x64xf32> to vector<2x64xf32>
    %49 = arith.truncf %41 : vector<2x64xf32> to vector<2x64xbf16>
    %cst_24 = arith.constant dense<0.000000e+00> : vector<2x64xf32>
    %50 = tpu.matmul %49, %0, %cst_24 {dimension_numbers = #tpu.dot_dimension_numbers<[1], [0], [0], [1], [0, 0, 1, 1], [], []>} : vector<2x64xbf16>, vector<64x64xbf16>, vector<2x64xf32> -> vector<2x64xf32>
    %51 = arith.addf %48, %50 : vector<2x64xf32>
    %52 = math.tanh %51 : vector<2x64xf32>
    %53 = arith.index_cast %c4_i32 : i32 to index
    %c0_25 = arith.constant 0 : index
    %c0_26 = arith.constant 0 : index
    %54 = vector.load %arg9[%53, %c0_25, %c0_26] : memref<8x2x64xf32, #tpu.memory_space<vmem>>, vector<1x2x64xf32>
    %55 = vector.shape_cast %54 : vector<1x2x64xf32> to vector<2x64xf32>
    %56 = vector.shape_cast %52 : vector<2x64xf32> to vector<1x2x64xf32>
    tpu.vector_store %arg9[%53, %c0_25, %c0_26], %56 {strides = array<i32>} : memref<8x2x64xf32, #tpu.memory_space<vmem>>, vector<1x2x64xf32>,
    %c5_i32 = arith.constant 5 : i32
    %57 = arith.index_cast %c5_i32 : i32 to index
    %c0_27 = arith.constant 0 : index
    %c0_28 = arith.constant 0 : index
    %58 = vector.load %arg0[%57, %c0_27, %c0_28] : memref<8x2x64xf32, #tpu.memory_space<vmem>>, vector<1x2x64xf32>
    %59 = vector.shape_cast %58 : vector<1x2x64xf32> to vector<2x64xf32>
    %60 = arith.truncf %52 : vector<2x64xf32> to vector<2x64xbf16>
    %cst_29 = arith.constant dense<0.000000e+00> : vector<2x64xf32>
    %61 = tpu.matmul %60, %0, %cst_29 {dimension_numbers = #tpu.dot_dimension_numbers<[1], [0], [0], [1], [0, 0, 1, 1], [], []>} : vector<2x64xbf16>, vector<64x64xbf16>, vector<2x64xf32> -> vector<2x64xf32>
    %62 = arith.addf %59, %61 : vector<2x64xf32>
    %63 = math.tanh %62 : vector<2x64xf32>
    %64 = arith.index_cast %c5_i32 : i32 to index
    %c0_30 = arith.constant 0 : index
    %c0_31 = arith.constant 0 : index
    %65 = vector.load %arg9[%64, %c0_30, %c0_31] : memref<8x2x64xf32, #tpu.memory_space<vmem>>, vector<1x2x64xf32>
    %66 = vector.shape_cast %65 : vector<1x2x64xf32> to vector<2x64xf32>
    %67 = vector.shape_cast %63 : vector<2x64xf32> to vector<1x2x64xf32>
    tpu.vector_store %arg9[%64, %c0_30, %c0_31], %67 {strides = array<i32>} : memref<8x2x64xf32, #tpu.memory_space<vmem>>, vector<1x2x64xf32>,
    %c6_i32 = arith.constant 6 : i32
    %68 = arith.index_cast %c6_i32 : i32 to index
    %c0_32 = arith.constant 0 : index
    %c0_33 = arith.constant 0 : index
    %69 = vector.load %arg0[%68, %c0_32, %c0_33] : memref<8x2x64xf32, #tpu.memory_space<vmem>>, vector<1x2x64xf32>
    %70 = vector.shape_cast %69 : vector<1x2x64xf32> to vector<2x64xf32>
    %71 = arith.truncf %63 : vector<2x64xf32> to vector<2x64xbf16>
    %cst_34 = arith.constant dense<0.000000e+00> : vector<2x64xf32>
    %72 = tpu.matmul %71, %0, %cst_34 {dimension_numbers = #tpu.dot_dimension_numbers<[1], [0], [0], [1], [0, 0, 1, 1], [], []>} : vector<2x64xbf16>, vector<64x64xbf16>, vector<2x64xf32> -> vector<2x64xf32>
    %73 = arith.addf %70, %72 : vector<2x64xf32>
    %74 = math.tanh %73 : vector<2x64xf32>
    %75 = arith.index_cast %c6_i32 : i32 to index
    %c0_35 = arith.constant 0 : index
    %c0_36 = arith.constant 0 : index
    %76 = vector.load %arg9[%75, %c0_35, %c0_36] : memref<8x2x64xf32, #tpu.memory_space<vmem>>, vector<1x2x64xf32>
    %77 = vector.shape_cast %76 : vector<1x2x64xf32> to vector<2x64xf32>
    %78 = vector.shape_cast %74 : vector<2x64xf32> to vector<1x2x64xf32>
    tpu.vector_store %arg9[%75, %c0_35, %c0_36], %78 {strides = array<i32>} : memref<8x2x64xf32, #tpu.memory_space<vmem>>, vector<1x2x64xf32>,
    %c7_i32 = arith.constant 7 : i32
    %79 = arith.index_cast %c7_i32 : i32 to index
    %c0_37 = arith.constant 0 : index
    %c0_38 = arith.constant 0 : index
    %80 = vector.load %arg0[%79, %c0_37, %c0_38] : memref<8x2x64xf32, #tpu.memory_space<vmem>>, vector<1x2x64xf32>
    %81 = vector.shape_cast %80 : vector<1x2x64xf32> to vector<2x64xf32>
    %82 = arith.truncf %74 : vector<2x64xf32> to vector<2x64xbf16>
    %cst_39 = arith.constant dense<0.000000e+00> : vector<2x64xf32>
    %83 = tpu.matmul %82, %0, %cst_39 {dimension_numbers = #tpu.dot_dimension_numbers<[1], [0], [0], [1], [0, 0, 1, 1], [], []>} : vector<2x64xbf16>, vector<64x64xbf16>, vector<2x64xf32> -> vector<2x64xf32>
    %84 = arith.addf %81, %83 : vector<2x64xf32>
    %85 = math.tanh %84 : vector<2x64xf32>
    %86 = arith.index_cast %c7_i32 : i32 to index
    %c0_40 = arith.constant 0 : index
    %c0_41 = arith.constant 0 : index
    %87 = vector.load %arg9[%86, %c0_40, %c0_41] : memref<8x2x64xf32, #tpu.memory_space<vmem>>, vector<1x2x64xf32>
    %88 = vector.shape_cast %87 : vector<1x2x64xf32> to vector<2x64xf32>
    %89 = vector.shape_cast %85 : vector<2x64xf32> to vector<1x2x64xf32>
    tpu.vector_store %arg9[%86, %c0_40, %c0_41], %89 {strides = array<i32>} : memref<8x2x64xf32, #tpu.memory_space<vmem>>, vector<1x2x64xf32>,
    %c8_i32 = arith.constant 8 : i32
    %c0_42 = arith.constant 0 : index
    %c0_43 = arith.constant 0 : index
    %90 = vector.load %arg8[%c0_42, %c0_43] : memref<2x64xf32, #tpu.memory_space<vmem>>, vector<2x64xf32>
    tpu.vector_store %arg8[%c0_42, %c0_43], %85 {strides = array<i32>} : memref<2x64xf32, #tpu.memory_space<vmem>>, vector<2x64xf32>,
    %c0_44 = arith.constant 0 : index
    %c0_45 = arith.constant 0 : index
    %c0_46 = arith.constant 0 : index
    %91 = vector.load %arg9[%c0_44, %c0_45, %c0_46] : memref<8x2x64xf32, #tpu.memory_space<vmem>>, vector<8x2x64xf32>
    %92 = vector.extract_strided_slice %91 {offsets = [0, 0, 0], sizes = [8, 2, 32], strides = [1, 1, 1]} : vector<8x2x64xf32> to vector<8x2x32xf32>
    %93 = vector.extract_strided_slice %91 {offsets = [0, 0, 32], sizes = [8, 2, 32], strides = [1, 1, 1]} : vector<8x2x64xf32> to vector<8x2x32xf32>
    %94 = vector.shape_cast %92 : vector<8x2x32xf32> to vector<1x8x2x32xf32>
    %cst_47 = arith.constant dense<0.000000e+00> : vector<1xf32>
    %95 = vector.multi_reduction <add>, %94, %cst_47 [1, 2, 3] : vector<1x8x2x32xf32> to vector<1xf32>
    %96 = vector.shape_cast %95 : vector<1xf32> to vector<1x1x1x1xf32>
    %97 = vector.extract %96[0, 0, 0, 0] : f32 from vector<1x1x1x1xf32>
    %cst_48 = arith.constant 0.001953125 : f32
    %98 = arith.mulf %97, %cst_48 : f32
    %99 = vector.shape_cast %93 : vector<8x2x32xf32> to vector<1x8x2x32xf32>
    %cst_49 = arith.constant dense<0.000000e+00> : vector<1xf32>
    %100 = vector.multi_reduction <add>, %99, %cst_49 [1, 2, 3] : vector<1x8x2x32xf32> to vector<1xf32>
    %101 = vector.shape_cast %100 : vector<1xf32> to vector<1x1x1x1xf32>
    %102 = vector.extract %101[0, 0, 0, 0] : f32 from vector<1x1x1x1xf32>
    %cst_50 = arith.constant 0.001953125 : f32
    %103 = arith.mulf %102, %cst_50 : f32
    %c0_51 = arith.constant 0 : index
    %c0_52 = arith.constant 0 : index
    %104 = vector.load %arg3[%c0_51, %c0_52] : memref<2x32xf32, #tpu.memory_space<vmem>>, vector<1x32xf32>
    %105 = vector.broadcast %98 : f32 to vector<1x32xf32>
    %106 = arith.mulf %104, %105 : vector<1x32xf32>
    %c1 = arith.constant 1 : index
    %c0_53 = arith.constant 0 : index
    %107 = vector.load %arg3[%c1, %c0_53] : memref<2x32xf32, #tpu.memory_space<vmem>>, vector<1x32xf32>
    %108 = vector.broadcast %103 : f32 to vector<1x32xf32>
    %109 = arith.mulf %107, %108 : vector<1x32xf32>
    %110 = arith.addf %106, %109 : vector<1x32xf32>
    %c0_54 = arith.constant 0 : index
    %c0_55 = arith.constant 0 : index
    %111 = vector.load %arg4[%c0_54, %c0_55] : memref<1x32xf32, #tpu.memory_space<vmem>>, vector<1x32xf32>
    %112 = arith.addf %110, %111 : vector<1x32xf32>
    %c0_56 = arith.constant 0 : index
    %c0_57 = arith.constant 0 : index
    %113 = vector.load %arg5[%c0_56, %c0_57] : memref<2x32xf32, #tpu.memory_space<vmem>>, vector<2x32xf32>
    %114 = vector.broadcast %112 : vector<1x32xf32> to vector<2x32xf32>
    %115 = arith.mulf %113, %114 : vector<2x32xf32>
    %cst_58 = arith.constant dense<0.000000e+00> : vector<2xf32>
    %116 = vector.multi_reduction <add>, %115, %cst_58 [1] : vector<2x32xf32> to vector<2xf32>
    %117 = vector.shape_cast %116 : vector<2xf32> to vector<2x1xf32>
    %c0_59 = arith.constant 0 : index
    %c0_60 = arith.constant 0 : index
    %118 = vector.load %arg6[%c0_59, %c0_60] : memref<2x1xf32, #tpu.memory_space<vmem>>, vector<2x1xf32>
    %119 = arith.addf %117, %118 : vector<2x1xf32>
    %120 = vector.shape_cast %119 : vector<2x1xf32> to vector<1x2x1xf32>
    %cst_61 = arith.constant dense<0xFF800000> : vector<1xf32>
    %121 = vector.multi_reduction <maximumf>, %120, %cst_61 [1, 2] : vector<1x2x1xf32> to vector<1xf32>
    %122 = vector.shape_cast %121 : vector<1xf32> to vector<1x1x1xf32>
    %123 = vector.extract %122[0, 0, 0] : f32 from vector<1x1x1xf32>
    %124 = vector.broadcast %123 : f32 to vector<2x1xf32>
    %125 = arith.subf %119, %124 : vector<2x1xf32>
    %126 = math.exp %125 : vector<2x1xf32>
    %127 = vector.shape_cast %126 : vector<2x1xf32> to vector<1x2x1xf32>
    %cst_62 = arith.constant dense<0.000000e+00> : vector<1xf32>
    %128 = vector.multi_reduction <add>, %127, %cst_62 [1, 2] : vector<1x2x1xf32> to vector<1xf32>
    %129 = vector.shape_cast %128 : vector<1xf32> to vector<1x1x1xf32>
    %130 = vector.extract %129[0, 0, 0] : f32 from vector<1x1x1xf32>
    %131 = vector.extract_strided_slice %126 {offsets = [0, 0], sizes = [1, 1], strides = [1, 1]} : vector<2x1xf32> to vector<1x1xf32>
    %132 = vector.shape_cast %131 : vector<1x1xf32> to vector<1x1x1xf32>
    %cst_63 = arith.constant dense<0.000000e+00> : vector<1xf32>
    %133 = vector.multi_reduction <add>, %132, %cst_63 [1, 2] : vector<1x1x1xf32> to vector<1xf32>
    %134 = vector.shape_cast %133 : vector<1xf32> to vector<1x1x1xf32>
    %135 = vector.extract %134[0, 0, 0] : f32 from vector<1x1x1xf32>
    %136 = arith.divf %135, %130 : f32
    %137 = vector.extract_strided_slice %126 {offsets = [1, 0], sizes = [1, 1], strides = [1, 1]} : vector<2x1xf32> to vector<1x1xf32>
    %138 = vector.shape_cast %137 : vector<1x1xf32> to vector<1x1x1xf32>
    %cst_64 = arith.constant dense<0.000000e+00> : vector<1xf32>
    %139 = vector.multi_reduction <add>, %138, %cst_64 [1, 2] : vector<1x1x1xf32> to vector<1xf32>
    %140 = vector.shape_cast %139 : vector<1xf32> to vector<1x1x1xf32>
    %141 = vector.extract %140[0, 0, 0] : f32 from vector<1x1x1xf32>
    %142 = arith.divf %141, %130 : f32
    %143 = vector.broadcast %136 : f32 to vector<8x2x32xf32>
    %144 = arith.mulf %92, %143 : vector<8x2x32xf32>
    %145 = vector.broadcast %142 : f32 to vector<8x2x32xf32>
    %146 = arith.mulf %93, %145 : vector<8x2x32xf32>
    %147 = arith.addf %144, %146 : vector<8x2x32xf32>
    %c0_65 = arith.constant 0 : index
    %c0_66 = arith.constant 0 : index
    %c0_67 = arith.constant 0 : index
    %148 = vector.load %arg7[%c0_65, %c0_66, %c0_67] : memref<8x2x32xf32, #tpu.memory_space<vmem>>, vector<8x2x32xf32>
    tpu.vector_store %arg7[%c0_65, %c0_66, %c0_67], %147 {strides = array<i32>} : memref<8x2x32xf32, #tpu.memory_space<vmem>>, vector<8x2x32xf32>,
    return
  }
}

</mosaic_0001>

<bundles_post_ra>
// kernel: rnn_module_forward.1
= control target key start
LH: loop header
LB: loop body
LE: loop exit
PB: predicated region body
PF: predicated region fallthrough
CT: control target
= control target key end

     0   :  { %v921_v1 = vmov 0.0   ;;  %vm922_vm0 = vmmov 0   ;;  %s1228_s0 = inlined_call_operand.vmem [shape: f32[8,2,64], index: 0, kind: input, shape index: {}]   ;;  %s1229_s1 = inlined_call_operand.vmem [shape: bf16[64,64], index: 1, kind: input, shape index: {}]   ;;  %s1230_s2 = inlined_call_operand.vmem [shape: f32[2,64], index: 2, kind: input, shape index: {}]   ;;  %s1231_s3 = inlined_call_operand.vmem [shape: f32[2,32], index: 3, kind: input, shape index: {}]   ;;  %s1232_s4 = inlined_call_operand.vmem [shape: f32[1,32], index: 4, kind: input, shape index: {}]   ;;  %s1233_s5 = inlined_call_operand.vmem [shape: f32[2,32], index: 5, kind: input, shape index: {}]   ;;  %s1234_s6 = inlined_call_operand.vmem [shape: f32[2,1], index: 6, kind: input, shape index: {}]   ;;  %s1235_s7 = inlined_call_operand.hbm [shape: f32[8,2,32], index: 7, kind: output, shape index: {0}]   ;;  %s1236_s8 = inlined_call_operand.vmem [shape: f32[2,64], index: 8, kind: output, shape index: {1}]  }
   0x1   :  { %v975_v0 = vld [vmem:[%s1229_s1 + $0x18] sm:$0xff]   ;;  %759 = vmatprep.subr.bf16.mxu0 %v921_v1  ;;  %771 = vmatprep.subr.bf16.mxu1 %v921_v1  ;;  %v983_v2 = vld [vmem:[%s1229_s1 + $0x10] sm:$0xff]  }
   0x2   :  { %760 = vmatpush3.bf16.msra.mxu0 %v975_v0  ;;  %767 = vmatprep.mubr.msk.bf16.mxu0 %vm922_vm0, %v921_v1 }
   0x3   :  { %761 = vmatprep.subr.bf16.mxu0 %v921_v1  ;;  %772 = vmatpush3.bf16.msra.mxu1 %v975_v0 }
   0x4   :  { %773 = vmatprep.subr.bf16.mxu1 %v921_v1  ;;  %779 = vmatprep.mubr.msk.bf16.mxu1 %vm922_vm0, %v921_v1 }
   0x5   :  { %14 = vsyncpa [#allocation4], 0  ;;  %v996_v3 = vld [vmem:[%s1229_s1 + $0x8] sm:$0xff]   ;;  %v1005_v4 = vld [vmem:[%s1229_s1] sm:$0xff]   ;;  %vm65_vm1 = vcmask 523264   ;;  %vm111_vm2 = vcmask 517120  }
   0x6   :  { %762 = vmatpush3.bf16.msra.mxu0 %v983_v2  ;;  %v38_v5 = vld [vmem:[%s1230_s2] sm:$0x3]  ;;  %s923_s15 = smov 96   ;;  %v705_v16 = vld [vmem:[%s1228_s0 + $0x2] sm:$0x3]  ;;  %vm472_vm3 = vcmask 254976  }
   0x7   :  { %763 = vmatprep.subr.bf16.mxu0 %v921_v1  ;;  %774 = vmatpush3.bf16.msra.mxu1 %v983_v2  ;;  %v40_v6 = vpack.c.bf16 %v38_v5, %v38_v5  ;;  %v39_v7 = vld [vmem:[%s1228_s0] sm:$0x3]  ;;  %v707_v25 = vld [vmem:[%s1228_s0 + $0x4] sm:$0x3]  ;;  %v709_v34 = vld [vmem:[%s1228_s0 + $0x6] sm:$0x3] }
   0x8   :  { %775 = vmatprep.subr.bf16.mxu1 %v921_v1  ;;  %v711_v43 = vld [vmem:[%s1228_s0 + $0x8] sm:$0x3]  ;;  %v713_v52 = vld [vmem:[%s1228_s0 + $0xa] sm:$0x3]  ;;  %v715_v61 = vld [vmem:[%s1228_s0 + $0xc] sm:$0x3] }
   0x9   :  { %vm575_vm4 = vcmask 1024  }
   0xa   :  { %764 = vmatpush3.bf16.msra.mxu0 %v996_v3 }
   0xb   :  { %765 = vmatprep.subr.bf16.mxu0 %v921_v1  ;;  %776 = vmatpush3.bf16.msra.mxu1 %v996_v3 }
   0xc   :  { %777 = vmatprep.subr.bf16.mxu1 %v921_v1 }
   0xe   :  { %766 = vmatpush3.bf16.msra.mxu0 %v1005_v4 }
   0xf   :  { %778 = vmatpush3.bf16.msra.mxu1 %v1005_v4  ;;  %783 = vmatprep.subr.bf16.mxu0 %v921_v1 }
  0x10   :  { %795 = vmatprep.subr.bf16.mxu1 %v921_v1 }
  0x11   :  { %768 = vmatmul.mubr.msk.bf16.vlgmr.msra.gmra.mxu0 %vm65_vm1, %v40_v6  ;;  %v717_v6 = vld [vmem:[%s1228_s0 + $0xe] sm:$0x3] }
  0x12   :  { %784 = vmatpush3.bf16.msra.mxu0 %v975_v0  ;;  %791 = vmatprep.mubr.msk.bf16.mxu0 %vm922_vm0, %v921_v1 }
  0x13   :  { %785 = vmatprep.subr.bf16.mxu0 %v921_v1 }
  0x16   :  { %786 = vmatpush3.bf16.msra.mxu0 %v983_v2 }
  0x17   :  { %787 = vmatprep.subr.bf16.mxu0 %v921_v1 }
  0x1a   :  { %788 = vmatpush3.bf16.msra.mxu0 %v996_v3 }
  0x1b   :  { %789 = vmatprep.subr.bf16.mxu0 %v921_v1 }
  0x1e   :  { %790 = vmatpush3.bf16.msra.mxu0 %v1005_v4 }
  0x1f   :  { %807 = vmatprep.subr.bf16.mxu0 %v921_v1 }
  0xd1   :  { %v103_v8 = vpop.f32.mrf.mxu0 }
  0xd2   :  { %v109_v9 = vadd.f32 %v103_v8, %v39_v7 }
  0xd3   :  { %v769_v10 = vpop.f32.mrf.mxu0 }
  0xd4   :  { %879 = vtanh.f32 %v109_v9 }
  0xd5   :  { %v106_v11 = vpop.f32.mrf.mxu0 }
  0xd7   :  { %v770_v12 = vpop.f32.mrf.mxu0 }
  0xe1   :  { %v880_v13 = vpop.eup %879 }
  0xe2   :  { %112 = vst.msk [vmem:[#allocation2] sm:$0x3] %vm111_vm2, %v880_v13  ;;  %v115_v14 = vpack.c.bf16 %v880_v13, %v880_v13 }
  0xe4   :  { %780 = vmatmul.mubr.msk.bf16.vlgmr.msra.gmra.mxu1 %vm65_vm1, %v115_v14 }
  0xe5   :  { %796 = vmatpush3.bf16.msra.mxu1 %v975_v0  ;;  %803 = vmatprep.mubr.msk.bf16.mxu1 %vm922_vm0, %v921_v1 }
  0xe6   :  { %797 = vmatprep.subr.bf16.mxu1 %v921_v1 }
  0xe9   :  { %v1037_v15 = vld [vmem:[#allocation2] sm:$0x3]  ;;  %798 = vmatpush3.bf16.msra.mxu1 %v983_v2 }
  0xea   :  { %506 = vrot.lane.b32.xlu0 %v1037_v15, %s923_s15  ;;  %799 = vmatprep.subr.bf16.mxu1 %v921_v1  ;;  %v473_v13 = vsel %vm472_vm3, %v1037_v15, 0.0 }
  0xed   :  { %800 = vmatpush3.bf16.msra.mxu1 %v996_v3 }
  0xee   :  { %801 = vmatprep.subr.bf16.mxu1 %v921_v1 }
  0xf1   :  { %802 = vmatpush3.bf16.msra.mxu1 %v1005_v4 }
  0xf2   :  { %819 = vmatprep.subr.bf16.mxu1 %v921_v1 }
 0x1a4   :  { %v153_v17 = vpop.f32.mrf.mxu1 }
 0x1a5   :  { %v159_v18 = vadd.f32 %v705_v16, %v153_v17 }
 0x1a6   :  { %v781_v19 = vpop.f32.mrf.mxu1 }
 0x1a7   :  { %881 = vtanh.f32 %v159_v18 }
 0x1a8   :  { %v156_v20 = vpop.f32.mrf.mxu1 }
 0x1aa   :  { %v782_v21 = vpop.f32.mrf.mxu1 }
 0x1b4   :  { %v882_v22 = vpop.eup %881 }
 0x1b5   :  { %162 = vst.msk [vmem:[#allocation2 + $0x2] sm:$0x3] %vm111_vm2, %v882_v22  ;;  %v165_v23 = vpack.c.bf16 %v882_v22, %v882_v22 }
 0x1b7   :  { %792 = vmatmul.mubr.msk.bf16.vlgmr.msra.gmra.mxu0 %vm65_vm1, %v165_v23 }
 0x1b8   :  { %808 = vmatpush3.bf16.msra.mxu0 %v975_v0  ;;  %815 = vmatprep.mubr.msk.bf16.mxu0 %vm922_vm0, %v921_v1 }
 0x1b9   :  { %809 = vmatprep.subr.bf16.mxu0 %v921_v1 }
 0x1bc   :  { %v1056_v24 = vld [vmem:[#allocation2 + $0x2] sm:$0x3]  ;;  %810 = vmatpush3.bf16.msra.mxu0 %v983_v2 }
 0x1bd   :  { %508 = vrot.lane.b32.xlu0 %v1056_v24, %s923_s15  ;;  %811 = vmatprep.subr.bf16.mxu0 %v921_v1  ;;  %v474_v12 = vsel %vm472_vm3, %v1056_v24, 0.0 }
 0x1be   :  { %v475_v16 = vadd.f32 %v474_v12, %v473_v13  ;;  %v558_v12 = vld [vmem:[%s1231_s3 + $0x1] sm:$0x1] }
 0x1c0   :  { %812 = vmatpush3.bf16.msra.mxu0 %v996_v3 }
 0x1c1   :  { %813 = vmatprep.subr.bf16.mxu0 %v921_v1 }
 0x1c4   :  { %814 = vmatpush3.bf16.msra.mxu0 %v1005_v4 }
 0x1c5   :  { %831 = vmatprep.subr.bf16.mxu0 %v921_v1 }
 0x277   :  { %v203_v26 = vpop.f32.mrf.mxu0 }
 0x278   :  { %v209_v27 = vadd.f32 %v707_v25, %v203_v26 }
 0x279   :  { %v793_v28 = vpop.f32.mrf.mxu0 }
 0x27a   :  { %883 = vtanh.f32 %v209_v27 }
 0x27b   :  { %v206_v29 = vpop.f32.mrf.mxu0 }
 0x27d   :  { %v794_v30 = vpop.f32.mrf.mxu0 }
 0x287   :  { %v884_v31 = vpop.eup %883 }
 0x288   :  { %212 = vst.msk [vmem:[#allocation2 + $0x4] sm:$0x3] %vm111_vm2, %v884_v31  ;;  %v215_v32 = vpack.c.bf16 %v884_v31, %v884_v31  ;;  %v507_v31 = vpop.permute.xlu0 %506 }
 0x28a   :  { %804 = vmatmul.mubr.msk.bf16.vlgmr.msra.gmra.mxu1 %vm65_vm1, %v215_v32 }
 0x28b   :  { %820 = vmatpush3.bf16.msra.mxu1 %v975_v0  ;;  %827 = vmatprep.mubr.msk.bf16.mxu1 %vm922_vm0, %v921_v1 }
 0x28c   :  { %821 = vmatprep.subr.bf16.mxu1 %v921_v1  ;;  %v509_v32 = vpop.permute.xlu0 %508 }
 0x28f   :  { %v1075_v33 = vld [vmem:[#allocation2 + $0x4] sm:$0x3]  ;;  %822 = vmatpush3.bf16.msra.mxu1 %v983_v2 }
 0x290   :  { %510 = vrot.lane.b32.xlu1 %v1075_v33, %s923_s15  ;;  %823 = vmatprep.subr.bf16.mxu1 %v921_v1  ;;  %v476_v14 = vsel %vm472_vm3, %v1075_v33, 0.0 }
 0x291   :  { %v477_v19 = vadd.f32 %v476_v14, %v475_v16 }
 0x293   :  { %824 = vmatpush3.bf16.msra.mxu1 %v996_v3 }
 0x294   :  { %825 = vmatprep.subr.bf16.mxu1 %v921_v1 }
 0x297   :  { %826 = vmatpush3.bf16.msra.mxu1 %v1005_v4 }
 0x298   :  { %843 = vmatprep.subr.bf16.mxu1 %v921_v1 }
 0x34a   :  { %v253_v35 = vpop.f32.mrf.mxu1 }
 0x34b   :  { %v259_v36 = vadd.f32 %v709_v34, %v253_v35  ;;  %v511_v34 = vpop.permute.xlu1 %510  ;;  %v531_v35 = vsel %vm472_vm3, %v509_v32, 0.0 }
 0x34c   :  { %v805_v37 = vpop.f32.mrf.mxu1 }
 0x34d   :  { %885 = vtanh.f32 %v259_v36  ;;  %v530_v37 = vsel %vm472_vm3, %v507_v31, 0.0 }
 0x34e   :  { %v256_v38 = vpop.f32.mrf.mxu1 }
 0x34f   :  { %v533_v38 = vsel %vm472_vm3, %v511_v34, 0.0 }
 0x350   :  { %v806_v39 = vpop.f32.mrf.mxu1 }
 0x351   :  { %v532_v39 = vadd.f32 %v531_v35, %v530_v37 }
 0x35a   :  { %v886_v40 = vpop.eup %885 }
 0x35b   :  { %262 = vst.msk [vmem:[#allocation2 + $0x6] sm:$0x3] %vm111_vm2, %v886_v40  ;;  %v265_v41 = vpack.c.bf16 %v886_v40, %v886_v40 }
 0x35d   :  { %816 = vmatmul.mubr.msk.bf16.vlgmr.msra.gmra.mxu0 %vm65_vm1, %v265_v41 }
 0x35e   :  { %832 = vmatpush3.bf16.msra.mxu0 %v975_v0  ;;  %839 = vmatprep.mubr.msk.bf16.mxu0 %vm922_vm0, %v921_v1 }
 0x35f   :  { %833 = vmatprep.subr.bf16.mxu0 %v921_v1 }
 0x362   :  { %v1094_v42 = vld [vmem:[#allocation2 + $0x6] sm:$0x3]  ;;  %834 = vmatpush3.bf16.msra.mxu0 %v983_v2 }
 0x363   :  { %512 = vrot.lane.b32.xlu1 %v1094_v42, %s923_s15  ;;  %835 = vmatprep.subr.bf16.mxu0 %v921_v1  ;;  %v478_v17 = vsel %vm472_vm3, %v1094_v42, 0.0 }
 0x364   :  { %v479_v21 = vadd.f32 %v478_v17, %v477_v19 }
 0x366   :  { %836 = vmatpush3.bf16.msra.mxu0 %v996_v3 }
 0x367   :  { %837 = vmatprep.subr.bf16.mxu0 %v921_v1 }
 0x36a   :  { %838 = vmatpush3.bf16.msra.mxu0 %v1005_v4 }
 0x3d5   :  { %v513_v36 = vpop.permute.xlu1 %512 }
 0x3d6   :  { %v535_v41 = vsel %vm472_vm3, %v513_v36, 0.0 }
 0x41d   :  { %v303_v44 = vpop.f32.mrf.mxu0 }
 0x41e   :  { %v309_v45 = vadd.f32 %v711_v43, %v303_v44  ;;  %v534_v43 = vadd.f32 %v533_v38, %v532_v39 }
 0x41f   :  { %v817_v46 = vpop.f32.mrf.mxu0 }
 0x420   :  { %887 = vtanh.f32 %v309_v45  ;;  %v536_v46 = vadd.f32 %v535_v41, %v534_v43 }
 0x421   :  { %v306_v47 = vpop.f32.mrf.mxu0 }
 0x423   :  { %v818_v48 = vpop.f32.mrf.mxu0 }
 0x42d   :  { %v888_v49 = vpop.eup %887 }
 0x42e   :  { %312 = vst.msk [vmem:[#allocation2 + $0x8] sm:$0x3] %vm111_vm2, %v888_v49  ;;  %v315_v50 = vpack.c.bf16 %v888_v49, %v888_v49 }
 0x430   :  { %828 = vmatmul.mubr.msk.bf16.vlgmr.msra.gmra.mxu1 %vm65_vm1, %v315_v50 }
 0x431   :  { %844 = vmatpush3.bf16.msra.mxu1 %v975_v0  ;;  %851 = vmatprep.mubr.msk.bf16.mxu1 %vm922_vm0, %v921_v1 }
 0x432   :  { %845 = vmatprep.subr.bf16.mxu1 %v921_v1 }
 0x435   :  { %v1112_v51 = vld [vmem:[#allocation2 + $0x8] sm:$0x3]  ;;  %846 = vmatpush3.bf16.msra.mxu1 %v983_v2 }
 0x436   :  { %514 = vrot.lane.b32.xlu0 %v1112_v51, %s923_s15  ;;  %847 = vmatprep.subr.bf16.mxu1 %v921_v1  ;;  %v480_v20 = vsel %vm472_vm3, %v1112_v51, 0.0 }
 0x437   :  { %v481_v23 = vadd.f32 %v480_v20, %v479_v21 }
 0x439   :  { %848 = vmatpush3.bf16.msra.mxu1 %v996_v3 }
 0x43a   :  { %849 = vmatprep.subr.bf16.mxu1 %v921_v1 }
 0x43d   :  { %850 = vmatpush3.bf16.msra.mxu1 %v1005_v4 }
 0x4a8   :  { %v515_v40 = vpop.permute.xlu0 %514 }
 0x4a9   :  { %v537_v45 = vsel %vm472_vm3, %v515_v40, 0.0 }
 0x4aa   :  { %v538_v49 = vadd.f32 %v537_v45, %v536_v46 }
 0x4f0   :  { %v353_v53 = vpop.f32.mrf.mxu1 }
 0x4f1   :  { %v359_v54 = vadd.f32 %v713_v52, %v353_v53 }
 0x4f2   :  { %v829_v55 = vpop.f32.mrf.mxu1 }
 0x4f3   :  { %889 = vtanh.f32 %v359_v54 }
 0x4f4   :  { %v356_v56 = vpop.f32.mrf.mxu1 }
 0x4f6   :  { %v830_v57 = vpop.f32.mrf.mxu1 }
 0x500   :  { %v890_v58 = vpop.eup %889 }
 0x501   :  { %362 = vst.msk [vmem:[#allocation2 + $0xa] sm:$0x3] %vm111_vm2, %v890_v58  ;;  %v365_v59 = vpack.c.bf16 %v890_v58, %v890_v58 }
 0x503   :  { %840 = vmatmul.mubr.msk.bf16.vlgmr.msra.gmra.mxu0 %vm65_vm1, %v365_v59 }
 0x508   :  { %v1126_v60 = vld [vmem:[#allocation2 + $0xa] sm:$0x3] }
 0x509   :  { %516 = vrot.lane.b32.xlu1 %v1126_v60, %s923_s15  ;;  %v482_v22 = vsel %vm472_vm3, %v1126_v60, 0.0 }
 0x50a   :  { %v483_v26 = vadd.f32 %v482_v22, %v481_v23  ;;  %v564_v22 = vld [vmem:[%s1233_s5] sm:$0x3] }
 0x57b   :  { %v517_v44 = vpop.permute.xlu1 %516 }
 0x57c   :  { %v539_v48 = vsel %vm472_vm3, %v517_v44, 0.0 }
 0x57d   :  { %v540_v52 = vadd.f32 %v539_v48, %v538_v49 }
 0x5c3   :  { %v403_v62 = vpop.f32.mrf.mxu0 }
 0x5c4   :  { %v409_v63 = vadd.f32 %v715_v61, %v403_v62 }
 0x5c5   :  { %v841_v0 = vpop.f32.mrf.mxu0 }
 0x5c6   :  { %891 = vtanh.f32 %v409_v63 }
 0x5c7   :  { %v406_v1 = vpop.f32.mrf.mxu0 }
 0x5c9   :  { %v842_v2 = vpop.f32.mrf.mxu0 }
 0x5d3   :  { %v892_v3 = vpop.eup %891 }
 0x5d4   :  { %412 = vst.msk [vmem:[#allocation2 + $0xc] sm:$0x3] %vm111_vm2, %v892_v3  ;;  %v415_v4 = vpack.c.bf16 %v892_v3, %v892_v3 }
 0x5d6   :  { %852 = vmatmul.mubr.msk.bf16.vlgmr.msra.gmra.mxu1 %vm65_vm1, %v415_v4 }
 0x5db   :  { %v1135_v5 = vld [vmem:[#allocation2 + $0xc] sm:$0x3] }
 0x5dc   :  { %518 = vrot.lane.b32.xlu0 %v1135_v5, %s923_s15  ;;  %v484_v25 = vsel %vm472_vm3, %v1135_v5, 0.0 }
 0x5dd   :  { %v485_v28 = vadd.f32 %v484_v25, %v483_v26 }
 0x64e   :  { %v519_v47 = vpop.permute.xlu0 %518 }
 0x64f   :  { %v541_v50 = vsel %vm472_vm3, %v519_v47, 0.0 }
 0x650   :  { %v542_v53 = vadd.f32 %v541_v50, %v540_v52 }
 0x696   :  { %v453_v7 = vpop.f32.mrf.mxu1 }
 0x697   :  { %v459_v8 = vadd.f32 %v717_v6, %v453_v7 }
 0x698   :  { %v853_v9 = vpop.f32.mrf.mxu1 }
 0x699   :  { %893 = vtanh.f32 %v459_v8  ;;  %v565_v9 = vlaneseq }
 0x69a   :  { %v456_v10 = vpop.f32.mrf.mxu1 }
 0x69b   :  { %v555_v10 = vld [vmem:[%s1231_s3] sm:$0x1]  ;;  %v566_v13 = vshrl.u32 %v565_v9, 7 }
 0x69c   :  { %v854_v11 = vpop.f32.mrf.mxu1 }
 0x69d   :  { %v567_v20 = vsub.s32 0, %v566_v13 }
 0x6a6   :  { %v894_v18 = vpop.eup %893 }
 0x6a7   :  { %462 = vst.msk [vmem:[#allocation2 + $0xe] sm:$0x3] %vm111_vm2, %v894_v18  ;;  %463 = vst.msk [vmem:[%s1236_s8] sm:$0x3] %vm111_vm2, %v894_v18  ;;  %v562_v18 = vld [vmem:[%s1232_s4] sm:$0x1] }
 0x6ae   :  { %v1161_v27 = vld [vmem:[#allocation2 + $0xe] sm:$0x3] }
 0x6af   :  { %520 = vrot.lane.b32.xlu1 %v1161_v27, %s923_s15  ;;  %v486_v29 = vsel %vm472_vm3, %v1161_v27, 0.0 }
 0x6b0   :  { %v487_v30 = vadd.f32 %v486_v29, %v485_v28  ;;  %v573_v28 = vld [vmem:[%s1234_s6] sm:$0x3] }
 0x6b2   :  { %488 = vadd.xlane.f32.xlu0 %v487_v30 }
 0x721   :  { %v521_v54 = vpop.permute.xlu1 %520 }
 0x722   :  { %v543_v55 = vsel %vm472_vm3, %v521_v54, 0.0 }
 0x723   :  { %v544_v56 = vadd.f32 %v543_v55, %v542_v53 }
 0x725   :  { %545 = vadd.xlane.f32.xlu1 %v544_v56 }
 0x73b   :  { %v489_v57 = vpop.xlane.xlu0 %488 }
 0x73c   :  { %v490_v58 = vrot.slane %v489_v57, 4 }
 0x73e   :  { %v491_v59 = vadd.f32 %v490_v58, %v489_v57 }
 0x740   :  { %v492_v61 = vrot.slane %v491_v59, 2 }
 0x742   :  { %v493_v62 = vadd.f32 %v492_v61, %v491_v59 }
 0x744   :  { %v494_v63 = vrot.slane %v493_v62, 1 }
 0x746   :  { %v495_v0 = vadd.f32 %v494_v63, %v493_v62 }
 0x748   :  { %855 = vpush %v495_v0 }
 0x779   :  { %s856_s8 = spop %855 }
 0x77a   :  { %s497_s9 = smul.f32 0.001953125, %s856_s8 }
 0x77c   :  { %v556_v11 = vstv %s497_s9 }
 0x77d   :  { %v557_v16 = vmul.f32 %v556_v11, %v555_v10 }
 0x7ae   :  { %v546_v1 = vpop.xlane.xlu1 %545 }
 0x7af   :  { %v547_v2 = vrot.slane %v546_v1, 4 }
 0x7b1   :  { %v548_v3 = vadd.f32 %v547_v2, %v546_v1 }
 0x7b3   :  { %v549_v4 = vrot.slane %v548_v3, 2 }
 0x7b5   :  { %v550_v6 = vadd.f32 %v549_v4, %v548_v3 }
 0x7b7   :  { %v551_v7 = vrot.slane %v550_v6, 1 }
 0x7b9   :  { %v552_v8 = vadd.f32 %v551_v7, %v550_v6 }
 0x7bb   :  { %857 = vpush %v552_v8 }
 0x7ec   :  { %s858_s10 = spop %857 }
 0x7ed   :  { %s554_s13 = smul.f32 0.001953125, %s858_s10 }
 0x7ef   :  { %v559_v14 = vstv %s554_s13 }
 0x7f0   :  { %v560_v17 = vmul.f32 %v559_v14, %v558_v12 }
 0x7f2   :  { %v561_v19 = vadd.f32 %v560_v17, %v557_v16 }
 0x7f4   :  { %v563_v21 = vadd.f32 %v562_v18, %v561_v19 }
 0x7f6   :  { %v568_v23 = vrot.slane %v563_v21, %v567_v20 }
 0x7f8   :  { %v569_v25 = vmul.f32 %v568_v23, %v564_v22 }
 0x7fa   :  { %v570_v26 = vsel %vm472_vm3, %v569_v25, 0.0 }
 0x7fb   :  { %571 = vadd.xlane.f32.xlu0 %v570_v26 }
 0x884   :  { %v572_v29 = vpop.xlane.xlu0 %571 }
 0x885   :  { %v574_v30 = vadd.f32 %v573_v28, %v572_v29 }
 0x887   :  { %v576_v31 = vsel %vm575_vm4, %v574_v30, -inf }
 0x888   :  { %577 = vmax.xlane.f32.xlu0 %v576_v31 }
 0x911   :  { %v578_v32 = vpop.xlane.xlu0 %577 }
 0x912   :  { %v579_v34 = vrot.slane %v578_v32, 4 }
 0x914   :  { %v580_v35 = vmax.f32 %v578_v32, %v579_v34 }
 0x916   :  { %v581_v36 = vrot.slane %v580_v35, 2 }
 0x918   :  { %v582_v37 = vmax.f32 %v580_v35, %v581_v36 }
 0x91a   :  { %v583_v38 = vrot.slane %v582_v37, 1 }
 0x91c   :  { %v584_v39 = vmax.f32 %v582_v37, %v583_v38 }
 0x91e   :  { %859 = vpush %v584_v39 }
 0x94f   :  { %s860_s4 = spop %859 }
 0x950   :  { %v586_v40 = vstv %s860_s4 }
 0x951   :  { %v587_v41 = vsub.f32 %v574_v30, %v586_v40 }
 0x953   :  { %v588_v43 = vmul.f32 1.442695, %v587_v41 }
 0x955   :  { %895 = vpow2.f32 %v588_v43 }
 0x962   :  { %v896_v44 = vpop.eup %895 }
 0x963   :  { %v590_v45 = vsel %vm575_vm4, %v896_v44, 0.0  ;;  %v607_v56 = vrot.slane %v896_v44, 1 }
 0x964   :  { %591 = vadd.xlane.f32.xlu1 %v590_v45 }
 0x9ed   :  { %v592_v46 = vpop.xlane.xlu1 %591 }
 0x9ee   :  { %v593_v47 = vrot.slane %v592_v46, 4 }
 0x9f0   :  { %v594_v48 = vadd.f32 %v593_v47, %v592_v46 }
 0x9f2   :  { %v595_v49 = vrot.slane %v594_v48, 2 }
 0x9f4   :  { %v596_v50 = vadd.f32 %v595_v49, %v594_v48 }
 0x9f6   :  { %v597_v52 = vrot.slane %v596_v50, 1 }
 0x9f8   :  { %v598_v53 = vadd.f32 %v597_v52, %v596_v50 }
 0x9fa   :  { %861 = vpush %v598_v53 }
 0x9fb   :  { %863 = vpush %v896_v44 }
 0xa2b   :  { %s862_s5 = spop %861 }
 0xa2c   :  { %v602_v54 = vstv %s862_s5  ;;  %s864_s6 = spop %863 }
 0xa2d   :  { %897 = vrcp.f32 %v602_v54 }
 0xa3a   :  { %v898_v55 = vpop.eup %897 }
 0xa3b   :  { %865 = vpush %v898_v55 }
 0xa3c   :  { %867 = vpush %v607_v56 }
 0xa6c   :  { %s866_s20 = spop %865 }
 0xa6d   :  { %s605_s21 = smul.f32 %s866_s20, %s864_s6  ;;  %s868_s22 = spop %867 }
 0xa6e   :  { %s613_s23 = smul.f32 %s868_s22, %s866_s20 }
 0xa6f   :  { %v614_v3 = vstv %s605_s21 }
 0xa70   :  { %v623_v57 = vstv %s613_s23  ;;  %v616_v4 = vmul.f32 %v614_v3, %v1056_v24  ;;  %v615_v6 = vmul.f32 %v614_v3, %v1037_v15  ;;  %v617_v11 = vmul.f32 %v614_v3, %v1075_v33 }
 0xa71   :  { %v625_v58 = vmul.f32 %v623_v57, %v1056_v24  ;;  %v624_v59 = vmul.f32 %v623_v57, %v1037_v15  ;;  %v626_v61 = vmul.f32 %v623_v57, %v1075_v33  ;;  %v627_v62 = vmul.f32 %v623_v57, %v1094_v42 }
 0xa72   :  { %v628_v63 = vmul.f32 %v623_v57, %v1112_v51  ;;  %v629_v0 = vmul.f32 %v623_v57, %v1126_v60  ;;  %v630_v1 = vmul.f32 %v623_v57, %v1135_v5  ;;  %v631_v2 = vmul.f32 %v623_v57, %v1161_v27 }
 0xa73   :  { %642 = vrot.lane.b32.xlu1 %v625_v58, %s923_s15  ;;  %640 = vrot.lane.b32.xlu0 %v624_v59, %s923_s15  ;;  %v618_v12 = vmul.f32 %v614_v3, %v1094_v42  ;;  %v619_v15 = vmul.f32 %v614_v3, %v1112_v51  ;;  %v620_v24 = vmul.f32 %v614_v3, %v1126_v60 }
 0xa74   :  { %v621_v33 = vmul.f32 %v614_v3, %v1135_v5  ;;  %v622_v42 = vmul.f32 %v614_v3, %v1161_v27 }
 0xa77   :  { %644 = vrot.lane.b32.xlu1 %v626_v61, %s923_s15  ;;  %646 = vrot.lane.b32.xlu0 %v627_v62, %s923_s15 }
 0xa7b   :  { %648 = vrot.lane.b32.xlu1 %v628_v63, %s923_s15  ;;  %650 = vrot.lane.b32.xlu0 %v629_v0, %s923_s15 }
 0xa7f   :  { %652 = vrot.lane.b32.xlu1 %v630_v1, %s923_s15  ;;  %654 = vrot.lane.b32.xlu0 %v631_v2, %s923_s15  ;;  %s924_s15 = smov [#allocation3]  }
 0xa80   :  { %s685_s24 = sshll.u32 %s924_s15, 4  ;;  %s686_s24 = int_to_ptr.vmem [resolvable:$true] %s685_s24 }
 0xa81   :  { %s899_s25 = scalar_lea.vmem %s686_s24, 256  ;;  %p904_p1 = scmp.lt.s32.totalorder %s686_s24, %s686_s24 }
 0xa82   :  { %p900_p0 = scmp.ne.s32.totalorder %s686_s24, %s899_s25  ;;  %p905_p2 = scmp.lt.s32.totalorder %s899_s25, %s899_s25 }
 0xa84   :  { %p906_p3 = por %p905_p2, %p904_p1 }
 0xa86   :  { %p907_p4 = pnand %p906_p3, %p900_p0 }
 0xae5   :  { %v643_v7 = vpop.permute.xlu1 %642  ;;  %v641_v8 = vpop.permute.xlu0 %640 }
 0xae6   :  { %v665_v9 = vadd.f32 %v643_v7, %v616_v4  ;;  %v664_v10 = vadd.f32 %v641_v8, %v615_v6 }
 0xae8   :  { %673 = vst.msk [vmem:[#allocation3 + $0x2] sm:$0x3] %vm472_vm3, %v665_v9  ;;  %672 = vst.msk [vmem:[#allocation3] sm:$0x3] %vm472_vm3, %v664_v10 }
 0xae9   :  { %v645_v13 = vpop.permute.xlu1 %644  ;;  %v647_v14 = vpop.permute.xlu0 %646 }
 0xaea   :  { %v666_v16 = vadd.f32 %v645_v13, %v617_v11  ;;  %v667_v17 = vadd.f32 %v647_v14, %v618_v12 }
 0xaec   :  { %674 = vst.msk [vmem:[#allocation3 + $0x4] sm:$0x3] %vm472_vm3, %v666_v16  ;;  %675 = vst.msk [vmem:[#allocation3 + $0x6] sm:$0x3] %vm472_vm3, %v667_v17 }
 0xaed   :  { %v649_v18 = vpop.permute.xlu1 %648  ;;  %v651_v19 = vpop.permute.xlu0 %650 }
 0xaee   :  { %v668_v20 = vadd.f32 %v649_v18, %v619_v15  ;;  %v669_v21 = vadd.f32 %v651_v19, %v620_v24 }
 0xaf0   :  { %676 = vst.msk [vmem:[#allocation3 + $0x8] sm:$0x3] %vm472_vm3, %v668_v20  ;;  %677 = vst.msk [vmem:[#allocation3 + $0xa] sm:$0x3] %vm472_vm3, %v669_v21 }
 0xaf1   :  { %v653_v22 = vpop.permute.xlu1 %652  ;;  %v655_v23 = vpop.permute.xlu0 %654 }
 0xaf2   :  { %v670_v25 = vadd.f32 %v653_v22, %v621_v33  ;;  %v671_v51 = vadd.f32 %v655_v23, %v622_v42 }
 0xaf4   :  { %678 = vst.msk [vmem:[#allocation3 + $0xc] sm:$0x3] %vm472_vm3, %v670_v25  ;;  %679 = vst.msk [vmem:[#allocation3 + $0xe] sm:$0x3] %vm472_vm3, %v671_v51 }
 0xaf5   :  { %910 = shalt.err (!%p907_p4)
}
 0xaf6   :  { %s925_s26 = smov 32   ;;  %s926_s27 = smov 2  }
 0xaf7   :  { %691 = dma.vmem_to_hbm [thread:$0]  %s686_s24, 256, %s1235_s7, [#allocation4], %s925_s26, %s925_s26, %s926_s27  }
 0xaf8   :  { %919 = dma.done.wait [#allocation4], 256  }
 0xaf9   :  { %920 = vsyncadd [#allocation4], 4294967040 }
 0xafa   :  { %699 = vsyncpa [#allocation4], 1 }

</bundles_post_ra>
